<compile_context>
chip_gen: v5e
topology: v5e:2x2
jax: 0.10.0
libtpu: 0.0.40
codegen_flags: <defaults>
</compile_context>

<pallas_src>
import functools

import numpy as np
import jax
import jax.numpy as jnp
from jax.experimental import pallas as pl
from jax.experimental.pallas import tpu as pltpu

_MIB = 1024 * 1024


# ---------------------------------------------------------------------------
# Kernels
# ---------------------------------------------------------------------------
def _linear_kernel_full_k(x_ref, w_ref, b_ref, o_ref, *, use_bf16):
    """Whole K in one tile: single MXU dot + bias, direct store, no scratch."""
    x = x_ref[...]
    w = w_ref[...]
    if use_bf16:
        # bf16 operands -> native single-pass MXU on v6e/v7x; f32 accumulate.
        x = x.astype(jnp.bfloat16)
        w = w.astype(jnp.bfloat16)
    o_ref[...] = (
        jnp.dot(x, w, preferred_element_type=jnp.float32) + b_ref[...]
    ).astype(o_ref.dtype)


def _linear_kernel_reduce_k(x_ref, w_ref, b_ref, o_ref, *, use_bf16):
    """K split on grid axis 2. The f32 output tile is resident across k, so
    accumulate straight into it (bias folded into the k==0 init). No scratch."""
    k = pl.program_id(2)

    @pl.when(k == 0)
    def _():
        o_ref[...] = jnp.broadcast_to(b_ref[...], o_ref.shape).astype(o_ref.dtype)

    x = x_ref[...]
    w = w_ref[...]
    if use_bf16:
        x = x.astype(jnp.bfloat16)
        w = w.astype(jnp.bfloat16)
    o_ref[...] += jnp.dot(x, w, preferred_element_type=jnp.float32)


# ---------------------------------------------------------------------------
# Tiling helpers (generation aware)
# ---------------------------------------------------------------------------
def _round_up(v, m):
    return ((v + m - 1) // m) * m


def _vmem_capacity_bytes():
    try:
        return int(pltpu.get_tpu_info().vmem_capacity_bytes)
    except Exception:
        return 64 * _MIB  # conservative (v7x-sized) fallback


def _chunk(dim, cap, quantum):
    """Tile size: multiple of `quantum`, <= cap, minimizing padding beyond
    round_up(dim, quantum) (e.g. K=1100, cap=1024 -> tk=640, Kp=1280)."""
    dq = _round_up(dim, quantum)
    n = -(-dq // cap)               # number of grid chunks along this dim
    return _round_up(-(-dq // n), quantum)


def _pick_kn_tiles(K, N, vmem_cap):
    # v5e/v6e have 128 MiB VMEM -> go big; v7x only 64 MiB -> stay smaller.
    big_vmem = vmem_cap >= 96 * _MIB
    tn = _chunk(N, 1024, 128)
    tk = _chunk(K, 2048 if big_vmem else 1024, 128)
    return tn, tk


def _pick_m_tile(M, N, tn, vmem_cap):
    big_vmem = vmem_cap >= 96 * _MIB
    tm_cap = 512 if big_vmem else 256
    # Multiple of 128 when M > 128 (unmasked stores, full MXU passes),
    # multiple of 8 (f32 sublane) otherwise.
    tm = _chunk(M, tm_cap, 128 if M > 128 else 8)
    # Keep both v7x TensorCores busy: if the parallel (i, j) grid would be a
    # single tile, split M in two when that adds no padding. Harmless on
    # single-core chips (one extra ~0.35us grid step; the W block index is
    # unchanged between the two steps so W is not re-fetched from HBM).
    if _round_up(M, tm) == tm and _round_up(N, tn) == tn:
        m8 = _round_up(M, 8)
        if m8 >= 16 and m8 % 16 == 0:
            tm = m8 // 2
    return tm


def _vmem_limit_bytes(tm, tn, tk, vmem_cap):
    # Double-buffered x / W / bias / out tiles, f32, no scratch accumulator.
    est = 4 * (2 * tm * tk + 2 * tk * tn + 2 * tn + 2 * tm * tn)
    # 2x slack, but never more than ~75% of physical VMEM (headroom matters
    # most on v7x where 64 MiB is the whole budget).
    ceiling = max(int(0.75 * vmem_cap), 32 * _MIB)
    return int(min(max(2 * est, 32 * _MIB), ceiling))


# ---------------------------------------------------------------------------
# Core pallas_call wrapper (expects tile-aligned, already-padded operands)
# ---------------------------------------------------------------------------
def _linear_padded(xp, wp, b2, M, N, tm, tn, tk, vmem_cap, *, use_bf16):
    Mp, Kp = xp.shape
    _, Np = wp.shape

    cost = pl.CostEstimate(
        flops=2 * Mp * Np * Kp,
        transcendentals=0,
        bytes_accessed=4 * (Mp * Kp + Kp * Np + Np + Mp * Np),
    )
    vmem_limit = _vmem_limit_bytes(tm, tn, tk, vmem_cap)

    if Kp == tk:
        # Fast path: whole K in one tile -> no reduction axis.
        kernel = functools.partial(_linear_kernel_full_k, use_bf16=use_bf16)
        out = pl.pallas_call(
            kernel,
            out_shape=jax.ShapeDtypeStruct((Mp, Np), jnp.float32),
            grid_spec=pltpu.PrefetchScalarGridSpec(
                num_scalar_prefetch=0,
                grid=(Mp // tm, Np // tn),
                in_specs=[
                    pl.BlockSpec((tm, Kp), lambda i, j: (i, 0)),  # x tile
                    pl.BlockSpec((Kp, tn), lambda i, j: (0, j)),  # W tile
                    pl.BlockSpec((1, tn), lambda i, j: (0, j)),   # bias tile
                ],
                out_specs=pl.BlockSpec((tm, tn), lambda i, j: (i, j)),
            ),
            compiler_params=pltpu.CompilerParams(
                dimension_semantics=("parallel", "parallel"),
                vmem_limit_bytes=vmem_limit,
            ),
            cost_estimate=cost,
        )(xp, wp, b2)
    else:
        # General path: K reduction on the last grid axis, accumulating
        # directly into the resident f32 output tile.
        kernel = functools.partial(_linear_kernel_reduce_k, use_bf16=use_bf16)
        out = pl.pallas_call(
            kernel,
            out_shape=jax.ShapeDtypeStruct((Mp, Np), jnp.float32),
            grid_spec=pltpu.PrefetchScalarGridSpec(
                num_scalar_prefetch=0,
                grid=(Mp // tm, Np // tn, Kp // tk),
                in_specs=[
                    pl.BlockSpec((tm, tk), lambda i, j, k: (i, k)),  # x tile
                    pl.BlockSpec((tk, tn), lambda i, j, k: (k, j)),  # W tile
                    pl.BlockSpec((1, tn), lambda i, j, k: (0, j)),   # bias
                ],
                out_specs=pl.BlockSpec((tm, tn), lambda i, j, k: (i, j)),
            ),
            compiler_params=pltpu.CompilerParams(
                dimension_semantics=("parallel", "parallel", "arbitrary"),
                vmem_limit_bytes=vmem_limit,
            ),
            cost_estimate=cost,
        )(xp, wp, b2)

    if Mp != M or Np != N:
        out = out[:M, :N]
    return out


# ---------------------------------------------------------------------------
# Public entry points
# ---------------------------------------------------------------------------
def my_linear(x, weight, bias, *, precision="bf16", tm=None, tn=None, tk=None):
    """out = x @ weight + bias.

    precision="bf16": cast operands to bf16 in-kernel (native MXU path on
    v6e/v7x, ~2-3x), f32 accumulate and f32 output.
    precision="f32": keep f32 operands (matches the f32 torch reference
    at 1e-5).

    For repeated calls with fixed parameters prefer MyLinearPallas below,
    which pads the weight/bias once at init instead of per call.
    """
    M, K = x.shape
    K2, N = weight.shape
    assert K == K2 and bias.shape == (N,)

    vmem_cap = _vmem_capacity_bytes()
    atn, atk = _pick_kn_tiles(K, N, vmem_cap)
    tn = atn if tn is None else tn
    tk = atk if tk is None else tk
    tm = _pick_m_tile(M, N, tn, vmem_cap) if tm is None else tm

    Mp, Np, Kp = _round_up(M, tm), _round_up(N, tn), _round_up(K, tk)
    # Zero padding is mathematically inert (padded K contributes 0; padded
    # output rows/cols are sliced off).
    xp = x if (Mp == M and Kp == K) else jnp.pad(x, ((0, Mp - M), (0, Kp - K)))
    wp = (weight if (Kp == K and Np == N)
          else jnp.pad(weight, ((0, Kp - K), (0, Np - N))))
    bp = bias if Np == N else jnp.pad(bias, (0, Np - N))

    return _linear_padded(xp, wp, bp.reshape(1, Np), M, N, tm, tn, tk,
                          vmem_cap, use_bf16=(precision == "bf16"))


def init_params(in_features, out_features, seed=0):
    """Uniform +/- sqrt(6/(in*out)) weight, zero bias (as in the torch module)."""
    w_bound = float(np.sqrt(6.0 / (in_features * out_features)))
    kw = jax.random.PRNGKey(seed)
    weight = jax.random.uniform(
        kw, (in_features, out_features), dtype=jnp.float32,
        minval=-w_bound, maxval=w_bound,
    )
    bias = jnp.zeros((out_features,), dtype=jnp.float32)
    return weight, bias


class MyLinearPallas:
    """Module-style port of MyLinear.

    Weight/bias are padded to tile multiples ONCE here (no per-call K*N HBM
    copy of the weight); only x is padded per call.
    """

    def __init__(self, in_features, out_features, seed=0, precision="bf16"):
        self.in_features = in_features
        self.out_features = out_features
        self.precision = precision
        self.weight, self.bias = init_params(in_features, out_features, seed)

        self._vmem_cap = _vmem_capacity_bytes()
        self._tn, self._tk = _pick_kn_tiles(in_features, out_features,
                                            self._vmem_cap)
        Kp = _round_up(in_features, self._tk)
        Np = _round_up(out_features, self._tn)
        wp = self.weight
        if (Kp, Np) != (in_features, out_features):
            wp = jnp.pad(self.weight,
                         ((0, Kp - in_features), (0, Np - out_features)))
        bp = (self.bias if Np == out_features
              else jnp.pad(self.bias, (0, Np - out_features)))
        self._wp = wp
        self._b2 = bp.reshape(1, Np)

    def __call__(self, x):
        M, K = x.shape
        assert K == self.in_features
        tm = _pick_m_tile(M, self.out_features, self._tn, self._vmem_cap)
        Mp = _round_up(M, tm)
        Kp = self._wp.shape[0]
        xp = (x if (Mp == M and Kp == K)
              else jnp.pad(x, ((0, Mp - M), (0, Kp - K))))
        return _linear_padded(xp, self._wp, self._b2, M, self.out_features,
                              tm, self._tn, self._tk, self._vmem_cap,
                              use_bf16=(self.precision == "bf16"))


# ---------------------------------------------------------------------------
# Demo / self-test
# ---------------------------------------------------------------------------
if __name__ == "__main__":
    # Small shapes consistent with a Linear layer: batch=16, in=256, out=128.
    M, K, N = 16, 256, 128
    key = jax.random.PRNGKey(0)
    x = jax.random.normal(key, (M, K), dtype=jnp.float32)
    weight, bias = init_params(K, N, seed=0)
    ref = jnp.dot(x, weight) + bias

    # 1) f32 precision, full-K fast path: matches the f32 reference tightly.
    out_f32 = jax.block_until_ready(my_linear(x, weight, bias, precision="f32"))
    np.testing.assert_allclose(np.asarray(out_f32), np.asarray(ref),
                               rtol=1e-5, atol=1e-5)

    # 2) f32 precision, forced K-reduction path (tk < K): validates the
    #    no-scratch accumulate-into-output kernel.
    out_red = jax.block_until_ready(
        my_linear(x, weight, bias, precision="f32", tk=128))
    np.testing.assert_allclose(np.asarray(out_red), np.asarray(ref),
                               rtol=1e-5, atol=1e-5)

    # 3) Default bf16-operand / f32-accumulate MXU path (relaxed tolerance).
    out_bf16 = jax.block_until_ready(my_linear(x, weight, bias))
    np.testing.assert_allclose(np.asarray(out_bf16), np.asarray(ref),
                               rtol=3e-2, atol=3e-2)

    # 4) Non-divisible shapes through the padding path (default bf16).
    M2, K2, N2 = 10, 200, 70
    x2 = jax.random.normal(jax.random.PRNGKey(1), (M2, K2), dtype=jnp.float32)
    w2, b2 = init_params(K2, N2, seed=2)
    ref2 = jnp.dot(x2, w2) + b2
    out2 = jax.block_until_ready(my_linear(x2, w2, b2))
    np.testing.assert_allclose(np.asarray(out2), np.asarray(ref2),
                               rtol=3e-2, atol=3e-2)

    # 5) Module-style wrapper: weight/bias padded once at init, x per call.
    layer = MyLinearPallas(K2, N2, seed=3, precision="f32")
    x3 = jax.random.normal(jax.random.PRNGKey(2), (5, K2), dtype=jnp.float32)
    out3 = jax.block_until_ready(layer(x3))
    ref3 = jnp.dot(x3, layer.weight) + layer.bias
    np.testing.assert_allclose(np.asarray(out3), np.asarray(ref3),
                               rtol=1e-5, atol=1e-5)

    print("KERNEL_OK")
</pallas_src>

<mosaic_0001>
module attributes {stable_mosaic.version = 11 : i64} {
  func.func @_linear_kernel_full_k(%arg0: i32, %arg1: i32, %arg2: memref<8x256xf32, #tpu.memory_space<vmem>>, %arg3: memref<256x128xf32, #tpu.memory_space<vmem>>, %arg4: memref<1x128xf32, #tpu.memory_space<vmem>>, %arg5: memref<8x128xf32, #tpu.memory_space<vmem>>) attributes {dimension_semantics = [#tpu.dimension_semantics<parallel>, #tpu.dimension_semantics<parallel>], iteration_bounds = array<i64: 2, 1>, scalar_prefetch = 0 : i64, scratch_operands = 0 : i64, tpu.core_type = #tpu.core_type<tc>, window_params = [{transform_indices = @transform_0, window_bounds = array<i64: 8, 256>}, {transform_indices = @transform_1, window_bounds = array<i64: 256, 128>}, {transform_indices = @transform_2, window_bounds = array<i64: 1, 128>}, {transform_indices = @transform_3, window_bounds = array<i64: 8, 128>}]} {
    %c0 = arith.constant 0 : index
    %c0_0 = arith.constant 0 : index
    %0 = vector.load %arg2[%c0, %c0_0] : memref<8x256xf32, #tpu.memory_space<vmem>>, vector<8x256xf32>
    %c0_1 = arith.constant 0 : index
    %c0_2 = arith.constant 0 : index
    %1 = vector.load %arg3[%c0_1, %c0_2] : memref<256x128xf32, #tpu.memory_space<vmem>>, vector<256x128xf32>
    %cst = arith.constant dense<0.000000e+00> : vector<8x128xf32>
    %2 = tpu.matmul %0, %1, %cst {dimension_numbers = #tpu.dot_dimension_numbers<[1], [0], [0], [1], [0, 0, 1, 1], [], []>} : vector<8x256xf32>, vector<256x128xf32>, vector<8x128xf32> -> vector<8x128xf32>
    %c0_3 = arith.constant 0 : index
    %c0_4 = arith.constant 0 : index
    %3 = vector.load %arg4[%c0_3, %c0_4] : memref<1x128xf32, #tpu.memory_space<vmem>>, vector<1x128xf32>
    %4 = vector.broadcast %3 : vector<1x128xf32> to vector<8x128xf32>
    %5 = arith.addf %2, %4 : vector<8x128xf32>
    %c0_5 = arith.constant 0 : index
    %c0_6 = arith.constant 0 : index
    %6 = vector.load %arg5[%c0_5, %c0_6] : memref<8x128xf32, #tpu.memory_space<vmem>>, vector<8x128xf32>
    tpu.vector_store %arg5[%c0_5, %c0_6], %5 {strides = array<i32>} : memref<8x128xf32, #tpu.memory_space<vmem>>, vector<8x128xf32>,
    return
  }
  func.func @transform_0(%arg0: i32, %arg1: i32) -> (i32, i32) {
    %c0_i32 = arith.constant 0 : i32
    %c0_i32_0 = arith.constant 0 : i32
    return %arg0, %c0_i32 : i32, i32
  }
  func.func @transform_1(%arg0: i32, %arg1: i32) -> (i32, i32) {
    %c0_i32 = arith.constant 0 : i32
    %c0_i32_0 = arith.constant 0 : i32
    return %c0_i32, %arg1 : i32, i32
  }
  func.func @transform_2(%arg0: i32, %arg1: i32) -> (i32, i32) {
    %c0_i32 = arith.constant 0 : i32
    %c0_i32_0 = arith.constant 0 : i32
    return %c0_i32, %arg1 : i32, i32
  }
  func.func @transform_3(%arg0: i32, %arg1: i32) -> (i32, i32) {
    %c0_i32 = arith.constant 0 : i32
    return %arg0, %arg1 : i32, i32
  }
}

</mosaic_0001>

<bundles_post_ra>
// kernel: tpu_custom_call.1
= control target key start
LH: loop header
LB: loop body
LE: loop exit
PB: predicated region body
PF: predicated region fallthrough
CT: control target
= control target key end

     0   :  { %8 = vsyncpa [#allocation3], 0  ;;  %s856_s0 = inlined_call_operand.hbm [shape: f32[16,256], index: 0, kind: input, shape index: {}]   ;;  %s857_s1 = inlined_call_operand.hbm [shape: f32[256,128], index: 1, kind: input, shape index: {}]   ;;  %s858_s2 = inlined_call_operand.vmem [shape: f32[1,128], index: 2, kind: input, shape index: {}]   ;;  %s859_s3 = inlined_call_operand.hbm [shape: f32[16,128], index: 3, kind: output, shape index: {}]  }
   0x1   :  { %10 = vsyncpa [#allocation3 + $0x1], 0 }
   0x2   :  { %11 = vsyncpa [#allocation6], 0 }
   0x3   :  { %12 = vsyncpa [#allocation4], 0 }
   0x4   :  { %14 = vsyncpa [#allocation4 + $0x1], 0  ;;  %s705_s12 = smov 0   ;;  %s707_s13 = smov 0  }
   0x5   :  { %s709_s14 = smov 0   ;;  %s711_s15 = smov 0  }
   0x6   :  { %s713_s16 = smov 0   ;;  %s715_s17 = smov 0  }
   0x7 LB: > { %s440_s18 = sadd.s32 4294967295, %s680_s17   ;;  %p442_p0 = scmp.ge.s32.totalorder %s680_s17, 1  ;;  %s680_s17 = sphi %s715_s17, %s20_s17   ;;  %s676_s16 = sphi %s713_s16, %s870_s16   ;;  %s672_s15 = sphi %s711_s15, %s869_s15   ;;  %s668_s14 = sphi %s709_s14, %s868_s14   ;;  %s664_s13 = sphi %s707_s13, %s867_s13   ;;  %s660_s12 = sphi %s705_s12, %s866_s12  }
   0x8   : > { %p737_p1 = scmp.eq.s32.totalorder %s440_s18, 0  ;;  %p143_p2 = scmp.lt.s32.totalorder %s680_s17, 3 }
   0x9   : > { %s156_s22 = sshll.u32 %s857_s1, 4  ;;  %s682_s24 = smov [#allocation5]   ;;  %s157_s22 = int_to_ptr.hbm [resolvable:$true] %s156_s22 }
   0xa   : > { %p745_p3 = pnand %p442_p0, %p143_p2  ;;  %s158_s25 = sshll.u32 %s682_s24, 4  ;;  %s159_s25 = int_to_ptr.vmem [resolvable:$true] %s158_s25 }
   0xb   : > { %p445_p6 = scmp.ge.s32.totalorder %s680_s17, 2  ;;  %s683_s26 = smov 128  }
   0xc   : > { %p466_p4 = pneg %p745_p3  ;;  %s684_s27 = smov 8  }
   0xd   : > { %s441_s28 = sadd.s32 4294967294, %s680_s17   ;;  %s32_s29 = sadd.s32 1, %s676_s16 }
   0xe   : > { %p467_p5 = pnand %p466_p4, %p737_p1  ;;  %s39_s30 = sadd.s32 1, %s668_s14 }
   0xf   : > { %p34_p7 = scmp.ge.s32.totalorder %s32_s29, 2  ;;  %p46_p8 = scmp.ne.s32.totalorder %s668_s14, %s664_s13 }
  0x10   : > { %469 = dma.hbm_to_vmem [thread:$0]  (!%p467_p5), %s157_s22, 4096, %s159_s25, [#allocation6], %s683_s26, %s683_s26, %s684_s27  }
  0x11   : > { %p47_p9 = scmp.eq.s32.totalorder %s680_s17, 0  ;;  %p52_p10 = scmp.ne.s32.totalorder %s664_s13, %s660_s12 }
  0x12   : > { %s872_s29 = smov (%p34_p7, %s32_s29), 0  ;;  %p130_p13 = scmp.eq.s32.totalorder %s440_s18, 1 }
  0x13   : > { %p764_p11 = por %p47_p9, %p46_p8  ;;  %p770_p12 = por %p737_p1, %p52_p10 }
  0x14   : > { %s36_s6 = ssub.s32 %s676_s16, %s872_s29  ;;  %p136_p2 = scmp.eq.s32.totalorder %s441_s28, 1 }
  0x15   : > { %p37_p0 = scmp.eq.s32.totalorder %s36_s6, 0  ;;  %p776_p4 = por %p130_p13, %p46_p8 }
  0x16   : > { %p479_p5 = scmp.lt.s32.totalorder %s680_s17, 2  ;;  %p784_p7 = por %p136_p2, %p52_p10 }
  0x17   : > { %s782_s8 = scalar_select %p37_p0, %s668_s14, %s39_s30  }
  0x18   : > { %s178_s10 = sand.u32 1, %s668_s14   ;;  %s457_s20 = sshll.u32 %s676_s16, 4 }
  0x19   : > { %s446_s11 = sshll.u32 %s178_s10, 4  ;;  %s187_s18 = scalar_lea.hbm %s856_s0, %s457_s20 }
  0x1a   : > { %s182_s24 = scalar_lea.vmem [#allocation2], %s446_s11  ;;  %s189_s26 = sshll.u32 %s187_s18, 4  ;;  %s190_s26 = int_to_ptr.hbm [resolvable:$true] %s189_s26 }
  0x1b   : > { %s191_s25 = sshll.u32 %s182_s24, 4  ;;  %p471_p8 = pnand %p479_p5, %p764_p11  ;;  %s192_s25 = int_to_ptr.vmem [resolvable:$true] %s191_s25 }
  0x1c   : > { %s179_s27 = scalar_lea.sflag [#allocation3], %s178_s10  ;;  %200 = sbr.rel (%p745_p3) target bundleno = 201 (0xc9), region = 32 }
  0x1d   : > { %473 = dma.hbm_to_vmem [thread:$0]  (!%p471_p8), %s190_s26, 256, %s192_s25, %s179_s27  }
  0x1e   : > { %s798_s28 = sand.u32 (!%p745_p3), 1, %s664_s13  }
  0x1f   : > { %s450_s30 = sshll.u32 (!%p745_p3), %s798_s28, 4  ;;  %s203_s6 = scalar_lea.sflag (!%p745_p3), [#allocation3], %s798_s28 }
  0x20   : > { %s802_s11 = scalar_lea.vmem (!%p745_p3), [#allocation2], %s450_s30 }
  0x21   : > { %647 = dma.done.wait (%p770_p12), %s203_s6, 256  }
  0x22   : > { %649 = vsyncadd (%p770_p12), %s203_s6, 4294967040 }
  0x23   : > { %651 = dma.done.wait (%p737_p1), [#allocation6], 4096  }
  0x24   : > { %653 = vsyncadd (%p737_p1), [#allocation6], 4294963200  ;;  %v258_v0 = vld [vmem:[#allocation5 + $0x78] sm:$0xff]  ;;  %v257_v1 = vld [vmem:[#allocation5 + $0x70] sm:$0xff]  ;;  %s452_s19 = sshll.u32 %s798_s28, 3  ;;  %s454_s23 = sshll.u32 %s672_s15, 3 }
  0x25   : > { %v274_v2 = vld [vmem:[#allocation5 + $0xf8] sm:$0xff]  ;;  %279 = vmatpush.msra.mxu0 %v258_v0  ;;  %v273_v3 = vld [vmem:[#allocation5 + $0xf0] sm:$0xff]  ;;  %v256_v4 = vld [vmem:[#allocation5 + $0x68] sm:$0xff]  ;;  %s332_s21 = scalar_lea.hbm %s859_s3, %s454_s23  ;;  %s237_s22 = scalar_lea.vmem [#allocation7], %s452_s19 }
  0x26   : > { %299 = vmatpush.msra.mxu1 %v274_v2  ;;  %v272_v5 = vld [vmem:[#allocation5 + $0xe8] sm:$0xff]  ;;  %v255_v6 = vld [vmem:[#allocation5 + $0x60] sm:$0xff]  ;;  %v254_v8 = vld [vmem:[#allocation5 + $0x58] sm:$0xff]  ;;  %s334_s18 = sshll.u32 %s237_s22, 4  ;;  %s336_s24 = sshll.u32 %s332_s21, 4  ;;  %s335_s18 = int_to_ptr.vmem [resolvable:$true] %s334_s18  ;;  %s337_s24 = int_to_ptr.hbm [resolvable:$true] %s336_s24 }
  0x27   : > { %280 = vmatpush.msra.mxu0 %v257_v1  ;;  %v271_v7 = vld [vmem:[#allocation5 + $0xe0] sm:$0xff]  ;;  %v270_v9 = vld [vmem:[#allocation5 + $0xd8] sm:$0xff]  ;;  %v253_v10 = vld [vmem:[#allocation5 + $0x50] sm:$0xff]  ;;  %s321_s15 = scalar_lea.sflag [#allocation4], %s798_s28  ;;  %s608_s25 = sshra.s32 %s337_s24, 4  ;;  %s609_s25 = int_to_ptr.hbm [resolvable:$true] %s608_s25 }
  0x28   : > { %300 = vmatpush.msra.mxu1 %v273_v3  ;;  %v269_v11 = vld [vmem:[#allocation5 + $0xd0] sm:$0xff]  ;;  %v252_v12 = vld [vmem:[#allocation5 + $0x48] sm:$0xff]  ;;  %v251_v14 = vld [vmem:[#allocation5 + $0x40] sm:$0xff]  ;;  %s610_s26 = scalar_lea.hbm %s609_s25, 8  ;;  %s614_s6 = scalar_lea.hbm %s859_s3, 16 }
  0x29   : > { %281 = vmatpush.msra.mxu0 %v256_v4  ;;  %v268_v13 = vld [vmem:[#allocation5 + $0xc8] sm:$0xff]  ;;  %v267_v15 = vld [vmem:[#allocation5 + $0xc0] sm:$0xff]  ;;  %v250_v16 = vld [vmem:[#allocation5 + $0x38] sm:$0xff]  ;;  %p611_p1 = scmp.ne.s32.totalorder %s609_s25, %s610_s26  ;;  %p615_p10 = scmp.lt.s32.totalorder %s609_s25, %s859_s3 }
  0x2a   : > { %301 = vmatpush.msra.mxu1 %v272_v5  ;;  %v266_v17 = vld [vmem:[#allocation5 + $0xb8] sm:$0xff]  ;;  %v249_v18 = vld [vmem:[#allocation5 + $0x30] sm:$0xff]  ;;  %v248_v20 = vld [vmem:[#allocation5 + $0x28] sm:$0xff]  ;;  %p616_p11 = scmp.lt.s32.totalorder %s614_s6, %s610_s26 }
  0x2b   : > { %282 = vmatpush.msra.mxu0 %v255_v6  ;;  %v265_v19 = vld [vmem:[#allocation5 + $0xb0] sm:$0xff]  ;;  %v264_v21 = vld [vmem:[#allocation5 + $0xa8] sm:$0xff]  ;;  %v247_v22 = vld [vmem:[#allocation5 + $0x20] sm:$0xff]  ;;  %p612_p3 = pnand %p611_p1, %p776_p4 }
  0x2c   : > { %302 = vmatpush.msra.mxu1 %v271_v7  ;;  %v263_v23 = vld [vmem:[#allocation5 + $0xa0] sm:$0xff]  ;;  %v246_v24 = vld [vmem:[#allocation5 + $0x18] sm:$0xff]  ;;  %v245_v26 = vld [vmem:[#allocation5 + $0x10] sm:$0xff]  ;;  %p617_p12 = por %p616_p11, %p615_p10 }
  0x2d   : > { %283 = vmatpush.msra.mxu0 %v254_v8  ;;  %v262_v25 = vld [vmem:[#allocation5 + $0x98] sm:$0xff]  ;;  %v261_v27 = vld [vmem:[#allocation5 + $0x90] sm:$0xff]  ;;  %v244_v28 = vld [vmem:[#allocation5 + $0x8] sm:$0xff]  ;;  %p613_p9 = pneg %p612_p3 }
  0x2e   : > { %303 = vmatpush.msra.mxu1 %v270_v9  ;;  %v260_v29 = vld [vmem:[#allocation5 + $0x88] sm:$0xff]  ;;  %v243_v30 = vld [vmem:[#allocation5] sm:$0xff] }
  0x2f   : > { %284 = vmatpush.msra.mxu0 %v253_v10  ;;  %v259_v31 = vld [vmem:[#allocation5 + $0x80] sm:$0xff]  ;;  %v242_v33 = vld [vmem:[%s802_s11 + $0x8] sm:$0xff]  ;;  %p618_p13 = pnand %p617_p12, %p613_p9 }
  0x30   : > { %304 = vmatpush.msra.mxu1 %v269_v11  ;;  %v241_v32 = vld [vmem:[%s802_s11] sm:$0xff] }
  0x31   : > { %285 = vmatpush.msra.mxu0 %v252_v12  ;;  %v533_v34 = vld [vmem:[%s858_s2] ss:$0 sm:$0xff] }
  0x32   : > { %305 = vmatpush.msra.mxu1 %v268_v13 }
  0x33   : > { %286 = vmatpush.msra.mxu0 %v251_v14 }
  0x34   : > { %306 = vmatpush.msra.mxu1 %v267_v15 }
  0x35   : > { %287 = vmatpush.msra.mxu0 %v250_v16 }
  0x36   : > { %307 = vmatpush.msra.mxu1 %v266_v17 }
  0x37   : > { %288 = vmatpush.msra.mxu0 %v249_v18 }
  0x38   : > { %308 = vmatpush.msra.mxu1 %v265_v19 }
  0x39   : > { %289 = vmatpush.msra.mxu0 %v248_v20 }
  0x3a   : > { %309 = vmatpush.msra.mxu1 %v264_v21 }
  0x3b   : > { %290 = vmatpush.msra.mxu0 %v247_v22 }
  0x3c   : > { %310 = vmatpush.msra.mxu1 %v263_v23 }
  0x3d   : > { %291 = vmatpush.msra.mxu0 %v246_v24 }
  0x3e   : > { %311 = vmatpush.msra.mxu1 %v262_v25 }
  0x3f   : > { %292 = vmatpush.msra.mxu0 %v245_v26 }
  0x40   : > { %312 = vmatpush.msra.mxu1 %v261_v27 }
  0x41   : > { %293 = vmatpush.msra.mxu0 %v244_v28 }
  0x42   : > { %313 = vmatpush.msra.mxu1 %v260_v29 }
  0x43   : > { %294 = vmatpush.msra.mxu0 %v243_v30 }
  0x44   : > { %314 = vmatpush.msra.mxu1 %v259_v31  ;;  %295 = vmatmul.f32.vlgmr.msra.gmra.mxu0 %v241_v32 }
  0x45   : > { %315 = vmatmul.f32.vlgmr.msra.gmra.mxu1 %v242_v33 }
  0xc1   : > { %v296_v35 = vpop.f32.mrf.mxu0 }
  0xc2   : > { %v316_v36 = vpop.f32.mrf.mxu1  ;;  %v297_v37 = vadd.f32 %v533_v34, %v296_v35 }
  0xc4   : > { %v317_v38 = vadd.f32 %v316_v36, %v297_v37 }
  0xc6   : > { %319 = vst [vmem:[%s237_s22] sm:$0xff] %v317_v38 }
  0xc7   : > { %621 = shalt.err (!%p618_p13)
}
  0xc8   : > { %464 = dma.vmem_to_hbm [thread:$0]  (%p776_p4), %s335_s18, 128, %s337_s24, %s321_s15  }
  0xc9 PF: > { %s348_s28 = sand.u32 1, %s660_s12   ;;  %p475_p0 = pnand %p445_p6, %p784_p7 }
  0xca   : > { %s349_s23 = scalar_lea.sflag [#allocation4], %s348_s28 }
  0xcb   : > { %p476_p2 = pneg %p475_p0 }
  0xcd   : > { %655 = dma.done.wait (%p476_p2), %s349_s23, 128  }
  0xce   : > { %657 = vsyncadd (%p476_p2), %s349_s23, 4294967168  ;;  %s20_s17 = sadd.s32 1, %s680_s17   ;;  %s866_s12 = smov %s664_s13 }
  0xcf   : > { %p17_p5 = scmp.ge.s32.totalorder %s20_s17, 4   ;;  %s867_s13 = smov %s668_s14 }
  0xd0   : > { %s868_s14 = smov %s782_s8  ;;  %s869_s15 = smov %s676_s16 }
  0xd1   : > { %s870_s16 = smov %s872_s29  ;;  %19 = sbr.rel (!%p17_p5) target bundleno = 7 (0x7), region = 85 }
  0xd6   :  { %355 = vsyncpa [#allocation3], 1 }
  0xd7   :  { %357 = vsyncpa [#allocation3 + $0x1], 1 }
  0xd8   :  { %358 = vsyncpa [#allocation6], 1 }
  0xd9   :  { %359 = vsyncpa [#allocation4], 1 }
  0xda   :  { %361 = vsyncpa [#allocation4 + $0x1], 1 }

</bundles_post_ra>
